<compile_context>
chip_gen: v6e
topology: v6e:2x2x1
jax: 0.10.0
libtpu: 0.0.40
codegen_flags: <defaults>
</compile_context>

<pallas_src>
import functools

import jax
import jax.numpy as jnp
import numpy as np
from jax.experimental import pallas as pl
from jax.experimental.pallas import tpu as pltpu

# ----------------------------- configuration --------------------------------
SR = 16000                         # mode='speech' -> target_sr == sr == 16000
FRAME_LEN = 128                    # L  (lane-aligned)
N_BANDS = 128                      # NB (lane-aligned filterbank output)
TB_MAX = 128                       # hard cap on utterances per grid step
VMEM_BUDGET_BYTES = 24 * 1024 * 1024   # per-step working-set budget (v7x-safe)
VMEM_LIMIT_BYTES = 48 * 1024 * 1024    # scoped VMEM limit (< v7x 64 MiB physical)
C1 = 0.01
C2 = 0.03
EPS = 1e-6


# ------------------------------ Pallas kernel --------------------------------
def _visqol_kernel(ref_ref, est_ref, fb_ref, out_ref,
                   sx, sy, sxx, syy, sxy, *, tb, fc, nf):
    # ref_ref/est_ref: (tb, fc, L)  bf16   batch tile x frame chunk
    # fb_ref:          (L, NB)      bf16   (Hann window pre-folded)
    # out_ref:         (1, tb, NB)  f32    per-utterance MOS (lane-broadcast)
    # sx..sxy:         (tb, NB)     f32    one-pass moment accumulators
    chunk = pl.program_id(1)
    last = pl.num_programs(1) - 1

    @pl.when(chunk == 0)
    def _():
        z = jnp.zeros((tb, N_BANDS), jnp.float32)
        sx[...] = z
        sy[...] = z
        sxx[...] = z
        syy[...] = z
        sxy[...] = z

    fb = fb_ref[...]                                            # (L, NB) bf16
    xr = ref_ref[...].reshape(tb * fc, FRAME_LEN)               # bf16
    xd = est_ref[...].reshape(tb * fc, FRAME_LEN)
    pr = jnp.dot(xr, fb, preferred_element_type=jnp.float32)    # (tb*fc, NB) f32
    pd = jnp.dot(xd, fb, preferred_element_type=jnp.float32)
    sr = jnp.log(jnp.abs(pr) + EPS).reshape(tb, fc, N_BANDS)
    sd = jnp.log(jnp.abs(pd) + EPS).reshape(tb, fc, N_BANDS)

    # One-pass moments over the frame axis (accumulated across chunks).
    sx[...] += jnp.sum(sr, axis=1)
    sy[...] += jnp.sum(sd, axis=1)
    sxx[...] += jnp.sum(sr * sr, axis=1)
    syy[...] += jnp.sum(sd * sd, axis=1)
    sxy[...] += jnp.sum(sr * sd, axis=1)

    @pl.when(chunk == last)
    def _():
        inv_n = 1.0 / float(nf)
        mu_r = sx[...] * inv_n
        mu_d = sy[...] * inv_n
        var_r = jnp.maximum(sxx[...] * inv_n - mu_r * mu_r, 0.0)
        var_d = jnp.maximum(syy[...] * inv_n - mu_d * mu_d, 0.0)
        cov = sxy[...] * inv_n - mu_r * mu_d

        lum = (2.0 * mu_r * mu_d + C1) / (mu_r * mu_r + mu_d * mu_d + C1)
        struct = (cov + C2) / (jnp.sqrt(var_r * var_d) + C2)

        nsim = jnp.mean(lum * struct, axis=1, keepdims=True)    # (tb, 1)
        mos = 1.0 + 4.0 * jnp.clip(nsim, 0.0, 1.0)              # (tb, 1)
        out_ref[...] = jnp.broadcast_to(mos[None, :, :], out_ref.shape)


# ------------------------------ host helpers ---------------------------------
def _build_filterbank():
    # Deterministic filterbank: DCT-like cosine bands (stand-in for gammatone),
    # with the Hann window folded in: (x*win) @ fb == x @ (win[:,None]*fb).
    l = np.arange(FRAME_LEN, dtype=np.float64)[:, None]          # (L, 1)
    k = np.arange(N_BANDS, dtype=np.float64)[None, :]            # (1, NB)
    fb = np.cos(np.pi * (l + 0.5) * (k + 1.0) / FRAME_LEN) / np.sqrt(FRAME_LEN)
    n = np.arange(FRAME_LEN, dtype=np.float64)
    win = 0.5 - 0.5 * np.cos(2.0 * np.pi * n / FRAME_LEN)
    return (win[:, None] * fb).astype(np.float32)                # (L, NB)


_FB_NP = _build_filterbank()


def _choose_tiles(B, nf):
    """Pick (tb, num_b_tiles, fc) from a VMEM budget; >=2 batch tiles if B>=2."""
    # Frame-chunk size: largest sublane-aligned divisor of nf (<= 512).
    fc = next((c for c in (512, 256, 128, 64, 32, 16, 8) if nf % c == 0), 8)
    # Per-(utterance, frame) VMEM bytes per step:
    #   2 bf16 inputs x 2 double-buffers (2*2*2) + ~4 live full-size f32 temps.
    bytes_per_uf = FRAME_LEN * (2 * 2 * 2 + 4 * 4)
    tb_cap = max(1, VMEM_BUDGET_BYTES // (bytes_per_uf * fc))
    tb_cap = int(min(tb_cap, TB_MAX, B))
    # At least 2 parallel batch tiles when possible -> both v7x TensorCores busy.
    min_tiles = 2 if B >= 2 else 1
    tb = min(tb_cap, max(1, -(-B // min_tiles)))
    num_b_tiles = -(-B // tb)
    return tb, num_b_tiles, fc


def visqol_forward(ref_wavs, est_wavs, reduction="mean"):
    """ref_wavs, est_wavs: (B, T) float32 with T a multiple of FRAME_LEN."""
    B, T = ref_wavs.shape
    assert T % FRAME_LEN == 0, "example uses non-overlapping full frames"
    nf = T // FRAME_LEN
    assert nf % 8 == 0, "frame count kept sublane-aligned (multiple of 8)"

    tb, num_b_tiles, fc = _choose_tiles(B, nf)
    num_chunks = nf // fc
    b_pad = num_b_tiles * tb

    # Free metadata reshape; host-side bf16 cast halves HBM->VMEM DMA bytes.
    ref3 = ref_wavs.reshape(B, nf, FRAME_LEN).astype(jnp.bfloat16)
    est3 = est_wavs.reshape(B, nf, FRAME_LEN).astype(jnp.bfloat16)
    if b_pad != B:
        pad = ((0, b_pad - B), (0, 0), (0, 0))
        ref3 = jnp.pad(ref3, pad)
        est3 = jnp.pad(est3, pad)

    fb = jnp.asarray(_FB_NP, dtype=jnp.bfloat16)

    kernel = functools.partial(_visqol_kernel, tb=tb, fc=fc, nf=nf)

    out = pl.pallas_call(
        kernel,
        out_shape=jax.ShapeDtypeStruct((num_b_tiles, tb, N_BANDS), jnp.float32),
        grid_spec=pltpu.PrefetchScalarGridSpec(
            num_scalar_prefetch=0,
            grid=(num_b_tiles, num_chunks),
            in_specs=[
                pl.BlockSpec((tb, fc, FRAME_LEN), lambda bt, c: (bt, c, 0)),
                pl.BlockSpec((tb, fc, FRAME_LEN), lambda bt, c: (bt, c, 0)),
                pl.BlockSpec((FRAME_LEN, N_BANDS), lambda bt, c: (0, 0)),
            ],
            out_specs=pl.BlockSpec((1, tb, N_BANDS), lambda bt, c: (bt, 0, 0)),
            scratch_shapes=[pltpu.VMEM((tb, N_BANDS), jnp.float32)] * 5,
        ),
        compiler_params=pltpu.CompilerParams(
            dimension_semantics=("parallel", "arbitrary"),
            vmem_limit_bytes=VMEM_LIMIT_BYTES,
        ),
    )(ref3, est3, fb)

    scores = out.reshape(b_pad, N_BANDS)[:B, 0]   # (B,) per-utterance MOS-like
    if reduction == "mean":
        return jnp.mean(scores)
    elif reduction == "batch":
        return scores
    else:
        raise ValueError(f"Unrecognized reduction: {reduction}")


if __name__ == "__main__":
    key = jax.random.PRNGKey(0)
    k1, k2 = jax.random.split(key)
    B, T = 2, 16 * FRAME_LEN                              # (2, 2048) @ 16 kHz
    ref = jax.random.normal(k1, (B, T), dtype=jnp.float32)
    est = ref + 0.1 * jax.random.normal(k2, (B, T), dtype=jnp.float32)

    mean_score = jax.block_until_ready(visqol_forward(ref, est, reduction="mean"))
    batch_scores = jax.block_until_ready(visqol_forward(ref, est, reduction="batch"))

    assert batch_scores.shape == (B,)
    assert jnp.isfinite(mean_score)
    assert bool(jnp.all(jnp.isfinite(batch_scores)))
    print("KERNEL_OK")
</pallas_src>

<mosaic_0001>
module attributes {stable_mosaic.version = 11 : i64} {
  func.func @_visqol_kernel(%arg0: i32, %arg1: i32, %arg2: memref<1x16x128xbf16, #tpu.memory_space<vmem>>, %arg3: memref<1x16x128xbf16, #tpu.memory_space<vmem>>, %arg4: memref<128x128xbf16, #tpu.memory_space<vmem>>, %arg5: memref<1x1x128xf32, #tpu.memory_space<vmem>>, %arg6: memref<1x128xf32, #tpu.memory_space<vmem>>, %arg7: memref<1x128xf32, #tpu.memory_space<vmem>>, %arg8: memref<1x128xf32, #tpu.memory_space<vmem>>, %arg9: memref<1x128xf32, #tpu.memory_space<vmem>>, %arg10: memref<1x128xf32, #tpu.memory_space<vmem>>) attributes {dimension_semantics = [#tpu.dimension_semantics<parallel>, #tpu.dimension_semantics<arbitrary>], iteration_bounds = array<i64: 2, 1>, scalar_prefetch = 0 : i64, scratch_operands = 5 : i64, tpu.core_type = #tpu.core_type<tc>, window_params = [{transform_indices = @transform_0, window_bounds = array<i64: 1, 16, 128>}, {transform_indices = @transform_1, window_bounds = array<i64: 1, 16, 128>}, {pipeline_mode = #tpu.pipeline_mode<synchronous>, transform_indices = @transform_2, window_bounds = array<i64: 128, 128>}, {transform_indices = @transform_3, window_bounds = array<i64: 1, 1, 128>}]} {
    %c0_i32 = arith.constant 0 : i32
    %0 = arith.cmpi eq, %arg1, %c0_i32 : i32
    %1 = arith.extui %0 : i1 to i32
    %c0_i32_0 = arith.constant 0 : i32
    %2 = arith.cmpi ne, %1, %c0_i32_0 : i32
    scf.if %2 {
      %cst_38 = arith.constant 0.000000e+00 : f32
      %46 = vector.broadcast %cst_38 : f32 to vector<1x128xf32>
      %c0_39 = arith.constant 0 : index
      %c0_40 = arith.constant 0 : index
      %47 = vector.load %arg6[%c0_39, %c0_40] : memref<1x128xf32, #tpu.memory_space<vmem>>, vector<1x128xf32>
      tpu.vector_store %arg6[%c0_39, %c0_40], %46 {strides = array<i32>} : memref<1x128xf32, #tpu.memory_space<vmem>>, vector<1x128xf32>,
      %c0_41 = arith.constant 0 : index
      %c0_42 = arith.constant 0 : index
      %48 = vector.load %arg7[%c0_41, %c0_42] : memref<1x128xf32, #tpu.memory_space<vmem>>, vector<1x128xf32>
      tpu.vector_store %arg7[%c0_41, %c0_42], %46 {strides = array<i32>} : memref<1x128xf32, #tpu.memory_space<vmem>>, vector<1x128xf32>,
      %c0_43 = arith.constant 0 : index
      %c0_44 = arith.constant 0 : index
      %49 = vector.load %arg8[%c0_43, %c0_44] : memref<1x128xf32, #tpu.memory_space<vmem>>, vector<1x128xf32>
      tpu.vector_store %arg8[%c0_43, %c0_44], %46 {strides = array<i32>} : memref<1x128xf32, #tpu.memory_space<vmem>>, vector<1x128xf32>,
      %c0_45 = arith.constant 0 : index
      %c0_46 = arith.constant 0 : index
      %50 = vector.load %arg9[%c0_45, %c0_46] : memref<1x128xf32, #tpu.memory_space<vmem>>, vector<1x128xf32>
      tpu.vector_store %arg9[%c0_45, %c0_46], %46 {strides = array<i32>} : memref<1x128xf32, #tpu.memory_space<vmem>>, vector<1x128xf32>,
      %c0_47 = arith.constant 0 : index
      %c0_48 = arith.constant 0 : index
      %51 = vector.load %arg10[%c0_47, %c0_48] : memref<1x128xf32, #tpu.memory_space<vmem>>, vector<1x128xf32>
      tpu.vector_store %arg10[%c0_47, %c0_48], %46 {strides = array<i32>} : memref<1x128xf32, #tpu.memory_space<vmem>>, vector<1x128xf32>,
    } else {
    }
    %c0 = arith.constant 0 : index
    %c0_1 = arith.constant 0 : index
    %3 = vector.load %arg4[%c0, %c0_1] : memref<128x128xbf16, #tpu.memory_space<vmem>>, vector<128x128xbf16>
    %c0_2 = arith.constant 0 : index
    %c0_3 = arith.constant 0 : index
    %c0_4 = arith.constant 0 : index
    %4 = vector.load %arg2[%c0_2, %c0_3, %c0_4] : memref<1x16x128xbf16, #tpu.memory_space<vmem>>, vector<1x16x128xbf16>
    %5 = vector.shape_cast %4 : vector<1x16x128xbf16> to vector<16x128xbf16>
    %c0_5 = arith.constant 0 : index
    %c0_6 = arith.constant 0 : index
    %c0_7 = arith.constant 0 : index
    %6 = vector.load %arg3[%c0_5, %c0_6, %c0_7] : memref<1x16x128xbf16, #tpu.memory_space<vmem>>, vector<1x16x128xbf16>
    %7 = vector.shape_cast %6 : vector<1x16x128xbf16> to vector<16x128xbf16>
    %cst = arith.constant dense<0.000000e+00> : vector<16x128xf32>
    %8 = tpu.matmul %5, %3, %cst {dimension_numbers = #tpu.dot_dimension_numbers<[1], [0], [0], [1], [0, 0, 1, 1], [], []>} : vector<16x128xbf16>, vector<128x128xbf16>, vector<16x128xf32> -> vector<16x128xf32>
    %cst_8 = arith.constant dense<0.000000e+00> : vector<16x128xf32>
    %9 = tpu.matmul %7, %3, %cst_8 {dimension_numbers = #tpu.dot_dimension_numbers<[1], [0], [0], [1], [0, 0, 1, 1], [], []>} : vector<16x128xbf16>, vector<128x128xbf16>, vector<16x128xf32> -> vector<16x128xf32>
    %10 = math.absf %8 : vector<16x128xf32>
    %cst_9 = arith.constant 9.99999997E-7 : f32
    %11 = vector.broadcast %cst_9 : f32 to vector<16x128xf32>
    %12 = arith.addf %10, %11 : vector<16x128xf32>
    %13 = math.log %12 : vector<16x128xf32>
    %14 = vector.shape_cast %13 : vector<16x128xf32> to vector<1x16x128xf32>
    %15 = math.absf %9 : vector<16x128xf32>
    %cst_10 = arith.constant 9.99999997E-7 : f32
    %16 = vector.broadcast %cst_10 : f32 to vector<16x128xf32>
    %17 = arith.addf %15, %16 : vector<16x128xf32>
    %18 = math.log %17 : vector<16x128xf32>
    %19 = vector.shape_cast %18 : vector<16x128xf32> to vector<1x16x128xf32>
    %c0_11 = arith.constant 0 : index
    %c0_12 = arith.constant 0 : index
    %20 = vector.load %arg6[%c0_11, %c0_12] : memref<1x128xf32, #tpu.memory_space<vmem>>, vector<1x128xf32>
    %cst_13 = arith.constant dense<0.000000e+00> : vector<1x128xf32>
    %21 = vector.multi_reduction <add>, %14, %cst_13 [1] : vector<1x16x128xf32> to vector<1x128xf32>
    %22 = arith.addf %20, %21 : vector<1x128xf32>
    %c0_14 = arith.constant 0 : index
    %c0_15 = arith.constant 0 : index
    %23 = vector.load %arg6[%c0_14, %c0_15] : memref<1x128xf32, #tpu.memory_space<vmem>>, vector<1x128xf32>
    tpu.vector_store %arg6[%c0_14, %c0_15], %22 {strides = array<i32>} : memref<1x128xf32, #tpu.memory_space<vmem>>, vector<1x128xf32>,
    %c0_16 = arith.constant 0 : index
    %c0_17 = arith.constant 0 : index
    %24 = vector.load %arg7[%c0_16, %c0_17] : memref<1x128xf32, #tpu.memory_space<vmem>>, vector<1x128xf32>
    %cst_18 = arith.constant dense<0.000000e+00> : vector<1x128xf32>
    %25 = vector.multi_reduction <add>, %19, %cst_18 [1] : vector<1x16x128xf32> to vector<1x128xf32>
    %26 = arith.addf %24, %25 : vector<1x128xf32>
    %c0_19 = arith.constant 0 : index
    %c0_20 = arith.constant 0 : index
    %27 = vector.load %arg7[%c0_19, %c0_20] : memref<1x128xf32, #tpu.memory_space<vmem>>, vector<1x128xf32>
    tpu.vector_store %arg7[%c0_19, %c0_20], %26 {strides = array<i32>} : memref<1x128xf32, #tpu.memory_space<vmem>>, vector<1x128xf32>,
    %c0_21 = arith.constant 0 : index
    %c0_22 = arith.constant 0 : index
    %28 = vector.load %arg8[%c0_21, %c0_22] : memref<1x128xf32, #tpu.memory_space<vmem>>, vector<1x128xf32>
    %29 = arith.mulf %14, %14 : vector<1x16x128xf32>
    %cst_23 = arith.constant dense<0.000000e+00> : vector<1x128xf32>
    %30 = vector.multi_reduction <add>, %29, %cst_23 [1] : vector<1x16x128xf32> to vector<1x128xf32>
    %31 = arith.addf %28, %30 : vector<1x128xf32>
    %c0_24 = arith.constant 0 : index
    %c0_25 = arith.constant 0 : index
    %32 = vector.load %arg8[%c0_24, %c0_25] : memref<1x128xf32, #tpu.memory_space<vmem>>, vector<1x128xf32>
    tpu.vector_store %arg8[%c0_24, %c0_25], %31 {strides = array<i32>} : memref<1x128xf32, #tpu.memory_space<vmem>>, vector<1x128xf32>,
    %c0_26 = arith.constant 0 : index
    %c0_27 = arith.constant 0 : index
    %33 = vector.load %arg9[%c0_26, %c0_27] : memref<1x128xf32, #tpu.memory_space<vmem>>, vector<1x128xf32>
    %34 = arith.mulf %19, %19 : vector<1x16x128xf32>
    %cst_28 = arith.constant dense<0.000000e+00> : vector<1x128xf32>
    %35 = vector.multi_reduction <add>, %34, %cst_28 [1] : vector<1x16x128xf32> to vector<1x128xf32>
    %36 = arith.addf %33, %35 : vector<1x128xf32>
    %c0_29 = arith.constant 0 : index
    %c0_30 = arith.constant 0 : index
    %37 = vector.load %arg9[%c0_29, %c0_30] : memref<1x128xf32, #tpu.memory_space<vmem>>, vector<1x128xf32>
    tpu.vector_store %arg9[%c0_29, %c0_30], %36 {strides = array<i32>} : memref<1x128xf32, #tpu.memory_space<vmem>>, vector<1x128xf32>,
    %c0_31 = arith.constant 0 : index
    %c0_32 = arith.constant 0 : index
    %38 = vector.load %arg10[%c0_31, %c0_32] : memref<1x128xf32, #tpu.memory_space<vmem>>, vector<1x128xf32>
    %39 = arith.mulf %14, %19 : vector<1x16x128xf32>
    %cst_33 = arith.constant dense<0.000000e+00> : vector<1x128xf32>
    %40 = vector.multi_reduction <add>, %39, %cst_33 [1] : vector<1x16x128xf32> to vector<1x128xf32>
    %41 = arith.addf %38, %40 : vector<1x128xf32>
    %c0_34 = arith.constant 0 : index
    %c0_35 = arith.constant 0 : index
    %42 = vector.load %arg10[%c0_34, %c0_35] : memref<1x128xf32, #tpu.memory_space<vmem>>, vector<1x128xf32>
    tpu.vector_store %arg10[%c0_34, %c0_35], %41 {strides = array<i32>} : memref<1x128xf32, #tpu.memory_space<vmem>>, vector<1x128xf32>,
    %c0_i32_36 = arith.constant 0 : i32
    %43 = arith.cmpi eq, %arg1, %c0_i32_36 : i32
    %44 = arith.extui %43 : i1 to i32
    %c0_i32_37 = arith.constant 0 : i32
    %45 = arith.cmpi ne, %44, %c0_i32_37 : i32
    scf.if %45 {
      %c0_38 = arith.constant 0 : index
      %c0_39 = arith.constant 0 : index
      %46 = vector.load %arg6[%c0_38, %c0_39] : memref<1x128xf32, #tpu.memory_space<vmem>>, vector<1x128xf32>
      %cst_40 = arith.constant 6.250000e-02 : f32
      %47 = vector.broadcast %cst_40 : f32 to vector<1x128xf32>
      %48 = arith.mulf %46, %47 : vector<1x128xf32>
      %c0_41 = arith.constant 0 : index
      %c0_42 = arith.constant 0 : index
      %49 = vector.load %arg7[%c0_41, %c0_42] : memref<1x128xf32, #tpu.memory_space<vmem>>, vector<1x128xf32>
      %cst_43 = arith.constant 6.250000e-02 : f32
      %50 = vector.broadcast %cst_43 : f32 to vector<1x128xf32>
      %51 = arith.mulf %49, %50 : vector<1x128xf32>
      %c0_44 = arith.constant 0 : index
      %c0_45 = arith.constant 0 : index
      %52 = vector.load %arg8[%c0_44, %c0_45] : memref<1x128xf32, #tpu.memory_space<vmem>>, vector<1x128xf32>
      %cst_46 = arith.constant 6.250000e-02 : f32
      %53 = vector.broadcast %cst_46 : f32 to vector<1x128xf32>
      %54 = arith.mulf %52, %53 : vector<1x128xf32>
      %55 = arith.mulf %48, %48 : vector<1x128xf32>
      %56 = arith.subf %54, %55 : vector<1x128xf32>
      %cst_47 = arith.constant 0.000000e+00 : f32
      %57 = vector.broadcast %cst_47 : f32 to vector<1x128xf32>
      %58 = arith.maximumf %56, %57 : vector<1x128xf32>
      %c0_48 = arith.constant 0 : index
      %c0_49 = arith.constant 0 : index
      %59 = vector.load %arg9[%c0_48, %c0_49] : memref<1x128xf32, #tpu.memory_space<vmem>>, vector<1x128xf32>
      %cst_50 = arith.constant 6.250000e-02 : f32
      %60 = vector.broadcast %cst_50 : f32 to vector<1x128xf32>
      %61 = arith.mulf %59, %60 : vector<1x128xf32>
      %62 = arith.mulf %51, %51 : vector<1x128xf32>
      %63 = arith.subf %61, %62 : vector<1x128xf32>
      %cst_51 = arith.constant 0.000000e+00 : f32
      %64 = vector.broadcast %cst_51 : f32 to vector<1x128xf32>
      %65 = arith.maximumf %63, %64 : vector<1x128xf32>
      %c0_52 = arith.constant 0 : index
      %c0_53 = arith.constant 0 : index
      %66 = vector.load %arg10[%c0_52, %c0_53] : memref<1x128xf32, #tpu.memory_space<vmem>>, vector<1x128xf32>
      %cst_54 = arith.constant 6.250000e-02 : f32
      %67 = vector.broadcast %cst_54 : f32 to vector<1x128xf32>
      %68 = arith.mulf %66, %67 : vector<1x128xf32>
      %69 = arith.mulf %48, %51 : vector<1x128xf32>
      %70 = arith.subf %68, %69 : vector<1x128xf32>
      %cst_55 = arith.constant 2.000000e+00 : f32
      %71 = vector.broadcast %cst_55 : f32 to vector<1x128xf32>
      %72 = arith.mulf %71, %48 : vector<1x128xf32>
      %73 = arith.mulf %72, %51 : vector<1x128xf32>
      %cst_56 = arith.constant 0.00999999977 : f32
      %74 = vector.broadcast %cst_56 : f32 to vector<1x128xf32>
      %75 = arith.addf %73, %74 : vector<1x128xf32>
      %76 = arith.mulf %48, %48 : vector<1x128xf32>
      %77 = arith.mulf %51, %51 : vector<1x128xf32>
      %78 = arith.addf %76, %77 : vector<1x128xf32>
      %cst_57 = arith.constant 0.00999999977 : f32
      %79 = vector.broadcast %cst_57 : f32 to vector<1x128xf32>
      %80 = arith.addf %78, %79 : vector<1x128xf32>
      %81 = arith.divf %75, %80 : vector<1x128xf32>
      %cst_58 = arith.constant 3.000000e-02 : f32
      %82 = vector.broadcast %cst_58 : f32 to vector<1x128xf32>
      %83 = arith.addf %70, %82 : vector<1x128xf32>
      %84 = arith.mulf %58, %65 : vector<1x128xf32>
      %85 = math.sqrt %84 : vector<1x128xf32>
      %cst_59 = arith.constant 3.000000e-02 : f32
      %86 = vector.broadcast %cst_59 : f32 to vector<1x128xf32>
      %87 = arith.addf %85, %86 : vector<1x128xf32>
      %88 = arith.divf %83, %87 : vector<1x128xf32>
      %89 = arith.mulf %81, %88 : vector<1x128xf32>
      %cst_60 = arith.constant dense<0.000000e+00> : vector<1xf32>
      %90 = vector.multi_reduction <add>, %89, %cst_60 [1] : vector<1x128xf32> to vector<1xf32>
      %91 = vector.shape_cast %90 : vector<1xf32> to vector<1x1xf32>
      %cst_61 = arith.constant 1.280000e+02 : f32
      %92 = vector.broadcast %cst_61 : f32 to vector<1x1xf32>
      %93 = arith.divf %91, %92 : vector<1x1xf32>
      %cst_62 = arith.constant 0.000000e+00 : f32
      %cst_63 = arith.constant 1.000000e+00 : f32
      %94 = vector.broadcast %cst_62 : f32 to vector<1x1xf32>
      %95 = arith.maximumf %94, %93 : vector<1x1xf32>
      %96 = vector.broadcast %cst_63 : f32 to vector<1x1xf32>
      %97 = arith.minimumf %96, %95 : vector<1x1xf32>
      %cst_64 = arith.constant 4.000000e+00 : f32
      %98 = vector.broadcast %cst_64 : f32 to vector<1x1xf32>
      %99 = arith.mulf %98, %97 : vector<1x1xf32>
      %cst_65 = arith.constant 1.000000e+00 : f32
      %100 = vector.broadcast %cst_65 : f32 to vector<1x1xf32>
      %101 = arith.addf %100, %99 : vector<1x1xf32>
      %102 = vector.shape_cast %101 : vector<1x1xf32> to vector<1x1x1xf32>
      %103 = vector.shape_cast %102 : vector<1x1x1xf32> to vector<1x1x1xf32>
      %104 = vector.broadcast %103 : vector<1x1x1xf32> to vector<1x1x128xf32>
      %c0_66 = arith.constant 0 : index
      %c0_67 = arith.constant 0 : index
      %c0_68 = arith.constant 0 : index
      %105 = vector.load %arg5[%c0_66, %c0_67, %c0_68] : memref<1x1x128xf32, #tpu.memory_space<vmem>>, vector<1x1x128xf32>
      tpu.vector_store %arg5[%c0_66, %c0_67, %c0_68], %104 {strides = array<i32>} : memref<1x1x128xf32, #tpu.memory_space<vmem>>, vector<1x1x128xf32>,
    } else {
    }
    return
  }
  func.func @transform_0(%arg0: i32, %arg1: i32) -> (i32, i32, i32) {
    %c0_i32 = arith.constant 0 : i32
    %c0_i32_0 = arith.constant 0 : i32
    return %arg0, %arg1, %c0_i32 : i32, i32, i32
  }
  func.func @transform_1(%arg0: i32, %arg1: i32) -> (i32, i32, i32) {
    %c0_i32 = arith.constant 0 : i32
    %c0_i32_0 = arith.constant 0 : i32
    return %arg0, %arg1, %c0_i32 : i32, i32, i32
  }
  func.func @transform_2(%arg0: i32, %arg1: i32) -> (i32, i32) {
    %c0_i32 = arith.constant 0 : i32
    %c0_i32_0 = arith.constant 0 : i32
    %c0_i32_1 = arith.constant 0 : i32
    return %c0_i32, %c0_i32_0 : i32, i32
  }
  func.func @transform_3(%arg0: i32, %arg1: i32) -> (i32, i32, i32) {
    %c0_i32 = arith.constant 0 : i32
    %c0_i32_0 = arith.constant 0 : i32
    %c0_i32_1 = arith.constant 0 : i32
    return %arg0, %c0_i32, %c0_i32_0 : i32, i32, i32
  }
}

</mosaic_0001>

<bundles_post_ra>
// kernel: tpu_custom_call.1
= control target key start
LH: loop header
LB: loop body
LE: loop exit
PB: predicated region body
PF: predicated region fallthrough
CT: control target
= control target key end

     0   :  { %s1278_s0 = inlined_call_operand.hbm [shape: bf16[2,16,128], index: 0, kind: input, shape index: {}]   ;;  %s1279_s1 = inlined_call_operand.hbm [shape: bf16[2,16,128], index: 1, kind: input, shape index: {}]   ;;  %s1280_s2 = inlined_call_operand.hbm [shape: bf16[128,128], index: 2, kind: input, shape index: {}]   ;;  %s1281_s3 = inlined_call_operand.hbm [shape: f32[2,1,128], index: 3, kind: output, shape index: {}]  }
   0x1   :  { %1287 = sst [smem:[#allocation19_spill]] %s1280_s2 }
   0x2   :  { %8 = vsyncpa [#allocation8], 0 }
   0x3   :  { %10 = vsyncpa [#allocation8 + $0x1], 0 }
   0x4   :  { %11 = vsyncpa [#allocation11], 0 }
   0x5   :  { %13 = vsyncpa [#allocation11 + $0x1], 0 }
   0x6   :  { %14 = vsyncpa [#allocation9], 0 }
   0x7   :  { %16 = vsyncpa [#allocation9 + $0x1], 0  ;;  %s1079_s12 = smov 0   ;;  %s1081_s13 = smov 0  }
   0x8   :  { %s1083_s14 = smov 0   ;;  %s1085_s15 = smov 0  }
   0x9   :  { %s1087_s16 = smov 0   ;;  %s1089_s17 = smov 0  }
   0xa LB: > { %s1110_s18 = sadd.s32 4294967295, %s1049_s17   ;;  %s686_s19 = sadd.s32 4294967294, %s1049_s17   ;;  %s1049_s17 = sphi %s1089_s17, %s22_s17   ;;  %s1045_s16 = sphi %s1087_s16, %s1307_s16   ;;  %s1041_s15 = sphi %s1085_s15, %s1306_s15   ;;  %s1037_s14 = sphi %s1083_s14, %s1305_s14   ;;  %s1033_s13 = sphi %s1081_s13, %s1304_s13   ;;  %s1029_s12 = sphi %s1079_s12, %s1303_s12  }
   0xb   : > { %p56_p0 = scmp.ne.s32.totalorder %s1033_s13, %s1029_s12  ;;  %p57_p1 = scmp.eq.s32.totalorder %s1110_s18, 0 }
   0xc   : > { %p135_p3 = scmp.eq.s32.totalorder %s686_s19, 1  ;;  %p687_p5 = scmp.ge.s32.totalorder %s1049_s17, 1 }
   0xd   : > { %p1119_p4 = por %p57_p1, %p56_p0  ;;  %p142_p7 = scmp.lt.s32.totalorder %s1049_s17, 3 }
   0xe   : > { %p1124_p6 = por %p135_p3, %p56_p0  ;;  %s1051_s23 = smov [#allocation12]  }
   0xf   : > { %p1129_p8 = pnand %p687_p5, %p142_p7  ;;  %s154_s24 = sshll.u32 %s1051_s23, 4  ;;  %s155_s24 = int_to_ptr.vmem [resolvable:$true] %s154_s24 }
  0x10   : > { %s1289_s21 = scalar_select %p1124_p6, 1, 0 }
  0x11   : > { %p783_p9 = pneg %p1129_p8  ;;  %s34_s26 = sadd.s32 1, %s1045_s16 }
  0x12   : > { %s890_s27 = scalar_lea.vmem %s155_s24, 1024  ;;  %p898_p5 = scmp.lt.s32.totalorder %s155_s24, %s155_s24 }
  0x13   : > { %p1138_p11 = pnand %p783_p9, %p57_p1  ;;  %p891_p13 = scmp.ne.s32.totalorder %s155_s24, %s890_s27 }
  0x14   : > { %p899_p7 = scmp.lt.s32.totalorder %s890_s27, %s890_s27 }
  0x15   : > { %p881_p12 = pneg %p1138_p11 }
  0x16   : > { %p900_p2 = por %p899_p7, %p898_p5 }
  0x17   : > { %p893_p0 = pnand %p891_p13, %p881_p12 }
  0x19   : > { %p894_p3 = pneg %p893_p0 }
  0x1b   : > { %p901_p6 = pnand %p900_p2, %p894_p3 }
  0x1d   : > { %904 = shalt.err (!%p901_p6)
}
  0x1e   : > { %s1282_s28 = smov 64   ;;  %s1284_s29 = smov 4  }
  0x1f   : > { %s1292_s2 = sld [smem:[#allocation19_spill]]  ;;  %p36_p2 = scmp.ge.s32.totalorder %s34_s26, 2 }
  0x20   : > { %s43_s5 = sadd.s32 1, %s1037_s14  ;;  %p50_p6 = scmp.ne.s32.totalorder %s1037_s14, %s1033_s13 }
  0x21   : > { %p51_p9 = scmp.eq.s32.totalorder %s1049_s17, 0  ;;  %s1309_s26 = smov (%p36_p2, %s34_s26), 0 }
  0x22   : > { %1293 = sst [smem:[#allocation18_spill]] %s1309_s26  ;;  %p1295_p13 = scmp.eq.s32.totalorder %s1110_s18, 1 }
  0x23   : > { %p1159_p12 = por %p51_p9, %p50_p6  ;;  %s38_s8 = ssub.s32 %s1045_s16, %s1309_s26 }
  0x24   : > { %p1165_p0 = por %p1295_p13, %p50_p6  ;;  %p799_p3 = scmp.lt.s32.totalorder %s1049_s17, 2 }
  0x25   : > { %786 = dma.hbm_to_vmem [thread:$0]  (!%p1138_p11), %s1292_s2, 1024, %s155_s24, [#allocation11], %s1282_s28, %s1282_s28, %s1284_s29  }
  0x26   : > { %p41_p11 = scmp.eq.s32.totalorder %s38_s8, 0  ;;  %s168_s9 = sand.u32 1, %s1037_s14  }
  0x27   : > { %s690_s10 = sshll.u32 %s168_s9, 3  ;;  %s713_s19 = sshll.u32 %s1045_s16, 7 }
  0x28   : > { %s1174_s11 = scalar_select %p41_p11, %s1037_s14, %s43_s5  }
  0x29   : > { %s180_s25 = scalar_lea.hbm %s1278_s0, %s713_s19  ;;  %s172_s27 = scalar_lea.vmem [#allocation7], %s690_s10 }
  0x2a   : > { %s181_s30 = sshll.u32 %s172_s27, 4  ;;  %p1182_p5 = pnand %p799_p3, %p1159_p12  ;;  %s182_s30 = int_to_ptr.vmem [resolvable:$true] %s181_s30 }
  0x2b   : > { %s1189_s5 = scalar_lea.hbm %s1279_s1, %s713_s19  ;;  %s195_s8 = scalar_lea.vmem [#allocation10], %s690_s10 }
  0x2c   : > { %s204_s2 = sshll.u32 %s195_s8, 4  ;;  %s169_s26 = scalar_lea.sflag [#allocation8], %s168_s9  ;;  %s205_s2 = int_to_ptr.vmem [resolvable:$true] %s204_s2 }
  0x2d   : > { %p907_p7 = pneg %p1182_p5  ;;  %s918_s23 = scalar_lea.vmem %s182_s30, 128 }
  0x2e   : > { %p919_p2 = scmp.ne.s32.totalorder %s182_s30, %s918_s23  ;;  %s1054_s6 = smov [#allocation7]  }
  0x2f   : > { %s923_s24 = sshll.u32 %s1054_s6, 4  ;;  %s924_s24 = int_to_ptr.vmem [resolvable:$false] %s923_s24 }
  0x30   : > { %p921_p6 = pnand %p919_p2, %p907_p7  ;;  %s925_s27 = scalar_lea.vmem %s924_s24, 256 }
  0x31   : > { %p926_p12 = scmp.lt.s32.totalorder %s182_s30, %s924_s24  ;;  %p927_p13 = scmp.lt.s32.totalorder %s925_s27, %s918_s23 }
  0x32   : > { %p922_p9 = pneg %p921_p6 }
  0x33   : > { %p928_p3 = por %p927_p13, %p926_p12 }
  0x35   : > { %p929_p11 = pnand %p928_p3, %p922_p9 }
  0x37   : > { %932 = shalt.err (!%p929_p11)
}
  0x38   : > { %s1298_s28 = smov 4   ;;  %s1299_s29 = smov 64  }
  0x39   : > { %790 = dma.hbm_to_vmem [thread:$0]  (!%p1182_p5), %s180_s25, 128, %s182_s30, %s169_s26, %s1299_s29, %s1299_s29, %s1298_s28  }
  0x3a   : > { %s191_s9 = sand.u32 1, %s1049_s17   ;;  %s946_s19 = scalar_lea.vmem %s205_s2, 128 }
  0x3b   : > { %s192_s10 = scalar_lea.sflag [#allocation11], %s191_s9  ;;  %p947_p2 = scmp.ne.s32.totalorder %s205_s2, %s946_s19 }
  0x3c   : > { %s1055_s8 = smov [#allocation10]  }
  0x3d   : > { %p949_p6 = pnand %p947_p2, %p907_p7  ;;  %s951_s23 = sshll.u32 %s1055_s8, 4  ;;  %s952_s23 = int_to_ptr.vmem [resolvable:$false] %s951_s23 }
  0x3e   : > { %s953_s6 = scalar_lea.vmem %s952_s23, 256  ;;  %p954_p9 = scmp.lt.s32.totalorder %s205_s2, %s952_s23 }
  0x3f   : > { %p950_p10 = pneg %p949_p6  ;;  %p955_p12 = scmp.lt.s32.totalorder %s953_s6, %s946_s19 }
  0x41   : > { %p956_p13 = por %p955_p12, %p954_p9 }
  0x43   : > { %p957_p3 = pnand %p956_p13, %p950_p10 }
  0x45   : > { %960 = shalt.err (!%p957_p3)
}
  0x46   : > { %793 = dma.hbm_to_vmem [thread:$0]  (!%p1182_p5), %s1189_s5, 128, %s205_s2, %s192_s10, %s1299_s29, %s1299_s29, %s1298_s28  }
  0x47   : > { %216 = sbr.rel (%p1129_p8) target bundleno = 568 (0x238), region = 32  ;;  %s1214_s26 = sand.u32 (!%p1129_p8), 1, %s1033_s13  }
  0x48   : > { %s697_s25 = sshll.u32 (!%p1129_p8), %s1214_s26, 3  ;;  %s219_s30 = scalar_lea.sflag (!%p1129_p8), [#allocation8], %s1214_s26 }
  0x49   : > { %s1218_s24 = scalar_lea.vmem (!%p1129_p8), [#allocation7], %s697_s25 }
  0x4c   : > { %1012 = dma.done.wait (%p1119_p4), %s219_s30, 128  }
  0x4d   : > { %1014 = vsyncadd (%p1119_p4), %s219_s30, 4294967168  ;;  %s227_s2 = sand.u32 1, %s1110_s18   ;;  %s1225_s4 = scalar_lea.vmem [#allocation10], %s697_s25 }
  0x4e   : > { %s228_s22 = scalar_lea.sflag [#allocation11], %s227_s2 }
  0x4f   : > { %1016 = dma.done.wait (%p1119_p4), %s228_s22, 128  }
  0x50   : > { %1018 = vsyncadd (%p1119_p4), %s228_s22, 4294967168 }
  0x51   : > { %1020 = dma.done.wait (%p57_p1), [#allocation11], 1024  }
  0x52   : > { %1022 = vsyncadd (%p57_p1), [#allocation11], 4294966272  ;;  %v1056_v0 = vmov 0.0   ;;  %vm1057_vm0 = vmmov 0   ;;  %v855_v1 = vld [vmem:[#allocation12 + $0x38] sm:$0xff]   ;;  %v856_v2 = vld [vmem:[#allocation12 + $0x30] sm:$0xff]  }
  0x53   : > { %733 = vmatprep.subr.bf16.mxu0 %v1056_v0  ;;  %269 = vst [vmem:[#allocation2] sm:$0x1] %v1056_v0  ;;  %270 = vst [vmem:[#allocation3] sm:$0x1] %v1056_v0  ;;  %753 = vmatprep.subr.bf16.mxu1 %v1056_v0  ;;  %v857_v3 = vld [vmem:[#allocation12 + $0x28] sm:$0xff]   ;;  %v858_v4 = vld [vmem:[#allocation12 + $0x20] sm:$0xff]  }
  0x54   : > { %271 = vst [vmem:[#allocation4] sm:$0x1] %v1056_v0  ;;  %272 = vst [vmem:[#allocation5] sm:$0x1] %v1056_v0  ;;  %749 = vmatprep.mubr.msk.bf16.mxu0 %vm1057_vm0, %v1056_v0  ;;  %769 = vmatprep.mubr.msk.bf16.mxu1 %vm1057_vm0, %v1056_v0  ;;  %v859_v5 = vld [vmem:[#allocation12 + $0x18] sm:$0xff]   ;;  %v860_v6 = vld [vmem:[#allocation12 + $0x10] sm:$0xff]  }
  0x55   : > { %273 = vst [vmem:[#allocation6] sm:$0x1] %v1056_v0  ;;  %734 = vmatpush3.bf16.msra.mxu0 %v855_v1  ;;  %754 = vmatpush3.bf16.msra.mxu1 %v855_v1  ;;  %v861_v7 = vld [vmem:[#allocation12 + $0x8] sm:$0xff]   ;;  %v862_v8 = vld [vmem:[#allocation12] sm:$0xff]   ;;  %v864_v10 = vld [vmem:[%s1225_s4] sm:$0xff]   ;;  %vm549_vm3 = vcmask 1040384  }
  0x56   : > { %735 = vmatprep.subr.bf16.mxu0 %v1056_v0  ;;  %755 = vmatprep.subr.bf16.mxu1 %v1056_v0  ;;  %v863_v9 = vld [vmem:[%s1218_s24] sm:$0xff]   ;;  %s710_s18 = sshll.u32 %s1041_s15, 4  ;;  %s261_s20 = scalar_lea.vmem [#allocation13], %s1214_s26 }
  0x57   : > { %s573_s5 = sshll.u32 %s261_s20, 4  ;;  %s571_s29 = scalar_lea.hbm %s1281_s3, %s710_s18  ;;  %s574_s5 = int_to_ptr.vmem [resolvable:$true] %s573_s5 }
  0x58   : > { %s561_s9 = scalar_lea.sflag [#allocation9], %s1214_s26  ;;  %s961_s10 = scalar_lea.vmem %s574_s5, 16 }
  0x59   : > { %736 = vmatpush3.bf16.msra.mxu0 %v856_v2  ;;  %756 = vmatpush3.bf16.msra.mxu1 %v856_v2  ;;  %p962_p1 = scmp.ne.s32.totalorder %s574_s5, %s961_s10  ;;  %s1058_s19 = smov [#allocation13]  }
  0x5a   : > { %737 = vmatprep.subr.bf16.mxu0 %v1056_v0  ;;  %757 = vmatprep.subr.bf16.mxu1 %v1056_v0  ;;  %v452_v1 = vld [vmem:[#allocation2] sm:$0x1]  ;;  %s965_s8 = sshll.u32 %s1058_s19, 4  ;;  %s966_s8 = int_to_ptr.vmem [resolvable:$false] %s965_s8 }
  0x5b   : > { %p963_p4 = pnand %p962_p1, %p1165_p0  ;;  %s967_s15 = scalar_lea.vmem %s966_s8, 32 }
  0x5c   : > { %p968_p10 = scmp.lt.s32.totalorder %s574_s5, %s966_s8  ;;  %p969_p5 = scmp.lt.s32.totalorder %s967_s15, %s961_s10 }
  0x5d   : > { %738 = vmatpush3.bf16.msra.mxu0 %v857_v3  ;;  %758 = vmatpush3.bf16.msra.mxu1 %v857_v3  ;;  %p964_p8 = pneg %p963_p4 }
  0x5e   : > { %739 = vmatprep.subr.bf16.mxu0 %v1056_v0  ;;  %759 = vmatprep.subr.bf16.mxu1 %v1056_v0  ;;  %p970_p7 = por %p969_p5, %p968_p10 }
  0x60   : > { %p971_p11 = pnand %p970_p7, %p964_p8 }
  0x61   : > { %740 = vmatpush3.bf16.msra.mxu0 %v858_v4  ;;  %760 = vmatpush3.bf16.msra.mxu1 %v858_v4 }
  0x62   : > { %741 = vmatprep.subr.bf16.mxu0 %v1056_v0  ;;  %761 = vmatprep.subr.bf16.mxu1 %v1056_v0 }
  0x65   : > { %742 = vmatpush3.bf16.msra.mxu0 %v859_v5  ;;  %762 = vmatpush3.bf16.msra.mxu1 %v859_v5 }
  0x66   : > { %743 = vmatprep.subr.bf16.mxu0 %v1056_v0  ;;  %763 = vmatprep.subr.bf16.mxu1 %v1056_v0 }
  0x69   : > { %744 = vmatpush3.bf16.msra.mxu0 %v860_v6  ;;  %764 = vmatpush3.bf16.msra.mxu1 %v860_v6 }
  0x6a   : > { %745 = vmatprep.subr.bf16.mxu0 %v1056_v0  ;;  %765 = vmatprep.subr.bf16.mxu1 %v1056_v0 }
  0x6d   : > { %746 = vmatpush3.bf16.msra.mxu0 %v861_v7  ;;  %766 = vmatpush3.bf16.msra.mxu1 %v861_v7  ;;  %v462_v7 = vld [vmem:[#allocation3] sm:$0x1] }
  0x6e   : > { %747 = vmatprep.subr.bf16.mxu0 %v1056_v0  ;;  %767 = vmatprep.subr.bf16.mxu1 %v1056_v0 }
  0x71   : > { %748 = vmatpush3.bf16.msra.mxu0 %v862_v8  ;;  %768 = vmatpush3.bf16.msra.mxu1 %v862_v8  ;;  %v472_v8 = vld [vmem:[#allocation4] sm:$0x1] }
  0x74   : > { %750 = vmatmul.mubr.bf16.vlgmr.msra.gmra.mxu0 %v863_v9  ;;  %770 = vmatmul.mubr.bf16.vlgmr.msra.gmra.mxu1 %v864_v10 }
 0x134   : > { %v382_v11 = vpop.f32.mrf.mxu0  ;;  %v429_v12 = vpop.f32.mrf.mxu1 }
 0x135   : > { %v436_v13 = vand.u32 2147483647, %v382_v11  ;;  %v444_v14 = vand.u32 2147483647, %v429_v12 }
 0x136   : > { %v751_v15 = vpop.f32.mrf.mxu0  ;;  %v771_v16 = vpop.f32.mrf.mxu1 }
 0x137   : > { %v438_v17 = vadd.f32 1e-06, %v436_v13  ;;  %v446_v18 = vadd.f32 1e-06, %v444_v14  ;;  %v484_v14 = vld [vmem:[#allocation5] sm:$0x1] }
 0x138   : > { %v385_v19 = vpop.f32.mrf.mxu0  ;;  %v432_v20 = vpop.f32.mrf.mxu1  ;;  %v496_v15 = vld [vmem:[#allocation6] sm:$0x1] }
 0x139   : > { %865 = vlog2.f32 %v438_v17  ;;  %v437_v21 = vand.u32 2147483647, %v385_v19  ;;  %v445_v22 = vand.u32 2147483647, %v432_v20 }
 0x13a   : > { %867 = vlog2.f32 %v446_v18  ;;  %v752_v23 = vpop.f32.mrf.mxu0  ;;  %v772_v24 = vpop.f32.mrf.mxu1 }
 0x13b   : > { %v439_v25 = vadd.f32 1e-06, %v437_v21  ;;  %v447_v26 = vadd.f32 1e-06, %v445_v22 }
 0x13d   : > { %869 = vlog2.f32 %v439_v25 }
 0x13e   : > { %871 = vlog2.f32 %v447_v26 }
 0x146   : > { %v866_v27 = vpop.eup %865 }
 0x147   : > { %v868_v28 = vpop.eup %867  ;;  %v441_v29 = vmul.f32 0.6931472, %v866_v27 }
 0x148   : > { %v449_v30 = vmul.f32 0.6931472, %v868_v28 }
 0x149   : > { %v473_v35 = vmul.f32 %v441_v29, %v441_v29 }
 0x14a   : > { %v870_v31 = vpop.eup %869  ;;  %v485_v36 = vmul.f32 %v449_v30, %v449_v30  ;;  %v497_v39 = vmul.f32 %v449_v30, %v441_v29 }
 0x14b   : > { %v872_v32 = vpop.eup %871  ;;  %v443_v33 = vmul.f32 0.6931472, %v870_v31 }
 0x14c   : > { %v451_v34 = vmul.f32 0.6931472, %v872_v32 }
 0x14d   : > { %v453_v37 = vadd.f32 %v443_v33, %v441_v29  ;;  %v474_v38 = vmul.f32 %v443_v33, %v443_v33 }
 0x14e   : > { %v463_v40 = vadd.f32 %v451_v34, %v449_v30  ;;  %v486_v41 = vmul.f32 %v451_v34, %v451_v34  ;;  %v498_v42 = vmul.f32 %v451_v34, %v443_v33 }
 0x14f   : > { %v454_v43 = vrot.slane %v453_v37, 4  ;;  %v475_v44 = vadd.f32 %v474_v38, %v473_v35 }
 0x150   : > { %v464_v45 = vrot.slane %v463_v40, 4  ;;  %v487_v46 = vadd.f32 %v486_v41, %v485_v36  ;;  %v499_v47 = vadd.f32 %v498_v42, %v497_v39 }
 0x151   : > { %v455_v48 = vadd.f32 %v454_v43, %v453_v37  ;;  %v476_v49 = vrot.slane %v475_v44, 4 }
 0x152   : > { %v465_v50 = vadd.f32 %v464_v45, %v463_v40  ;;  %v488_v51 = vrot.slane %v487_v46, 4  ;;  %v500_v52 = vrot.slane %v499_v47, 4 }
 0x153   : > { %v456_v53 = vrot.slane %v455_v48, 2  ;;  %v477_v54 = vadd.f32 %v476_v49, %v475_v44 }
 0x154   : > { %v466_v55 = vrot.slane %v465_v50, 2  ;;  %v489_v56 = vadd.f32 %v488_v51, %v487_v46  ;;  %v501_v57 = vadd.f32 %v500_v52, %v499_v47 }
 0x155   : > { %v457_v58 = vadd.f32 %v456_v53, %v455_v48  ;;  %v478_v59 = vrot.slane %v477_v54, 2 }
 0x156   : > { %v467_v60 = vadd.f32 %v466_v55, %v465_v50  ;;  %v490_v61 = vrot.slane %v489_v56, 2  ;;  %v502_v62 = vrot.slane %v501_v57, 2 }
 0x157   : > { %v458_v63 = vrot.slane %v457_v58, 1  ;;  %v479_v0 = vadd.f32 %v478_v59, %v477_v54 }
 0x158   : > { %v468_v2 = vrot.slane %v467_v60, 1  ;;  %v491_v3 = vadd.f32 %v490_v61, %v489_v56  ;;  %v503_v4 = vadd.f32 %v502_v62, %v501_v57 }
 0x159   : > { %v459_v5 = vadd.f32 %v458_v63, %v457_v58  ;;  %v480_v6 = vrot.slane %v479_v0, 1 }
 0x15a   : > { %v469_v9 = vadd.f32 %v468_v2, %v467_v60  ;;  %v492_v10 = vrot.slane %v491_v3, 1  ;;  %v504_v11 = vrot.slane %v503_v4, 1 }
 0x15b   : > { %v460_v12 = vadd.f32 %v459_v5, %v452_v1  ;;  %v481_v13 = vadd.f32 %v480_v6, %v479_v0 }
 0x15c   : > { %v470_v16 = vadd.f32 %v469_v9, %v462_v7  ;;  %v493_v17 = vadd.f32 %v492_v10, %v491_v3  ;;  %v505_v18 = vadd.f32 %v504_v11, %v503_v4 }
 0x15d   : > { %461 = vst [vmem:[#allocation2] sm:$0x1] %v460_v12  ;;  %v482_v19 = vadd.f32 %v481_v13, %v472_v8 }
 0x15e   : > { %471 = vst [vmem:[#allocation3] sm:$0x1] %v470_v16  ;;  %v494_v20 = vadd.f32 %v493_v17, %v484_v14  ;;  %v506_v21 = vadd.f32 %v505_v18, %v496_v15 }
 0x15f   : > { %483 = vst [vmem:[#allocation4] sm:$0x1] %v482_v19 }
 0x160   : > { %495 = vst [vmem:[#allocation5] sm:$0x1] %v494_v20  ;;  %507 = vst [vmem:[#allocation6] sm:$0x1] %v506_v21 }
 0x164   : > { %v511_v22 = vld [vmem:[#allocation2] sm:$0x1] }
 0x165   : > { %v512_v23 = vmul.f32 0.0625, %v511_v22  ;;  %v513_v24 = vld [vmem:[#allocation3] sm:$0x1] }
 0x166   : > { %v514_v25 = vmul.f32 0.0625, %v513_v24  ;;  %v515_v26 = vld [vmem:[#allocation4] sm:$0x1] }
 0x167   : > { %v516_v27 = vmul.f32 0.0625, %v515_v26  ;;  %v517_v28 = vmul.f32 %v512_v23, %v512_v23  ;;  %v520_v29 = vld [vmem:[#allocation5] sm:$0x1]  ;;  %v525_v45 = vld [vmem:[#allocation6] sm:$0x1]  ;;  %v529_v48 = vmul.f32 2.0, %v512_v23 }
 0x168   : > { %v521_v30 = vmul.f32 0.0625, %v520_v29  ;;  %v522_v31 = vmul.f32 %v514_v25, %v514_v25  ;;  %v526_v46 = vmul.f32 0.0625, %v525_v45  ;;  %v527_v47 = vmul.f32 %v514_v25, %v512_v23 }
 0x169   : > { %v518_v32 = vsub.f32 %v516_v27, %v517_v28  ;;  %v530_v50 = vmul.f32 %v529_v48, %v514_v25 }
 0x16a   : > { %v523_v33 = vsub.f32 %v521_v30, %v522_v31  ;;  %v532_v37 = vadd.f32 %v522_v31, %v517_v28  ;;  %v528_v49 = vsub.f32 %v526_v46, %v527_v47 }
 0x16b   : > { %v519_v34 = vmax.f32 %v518_v32, 0.0  ;;  %v531_v52 = vadd.f32 0.01, %v530_v50 }
 0x16c   : > { %v524_v35 = vmax.f32 %v523_v33, 0.0  ;;  %v533_v39 = vadd.f32 0.01, %v532_v37  ;;  %v536_v53 = vadd.f32 0.03, %v528_v49 }
 0x16e   : > { %v537_v36 = vmul.f32 %v524_v35, %v519_v34 }
 0x170   : > { %873 = vrsqrt.f32 %v537_v36  ;;  %vm540_vm1 = vcmp.eq.f32.partialorder %v537_v36, inf  ;;  %v543_v41 = vand.u32 2147483648, %v537_v36  ;;  %vm542_vm2 = vcmp.eq.f32.partialorder %v537_v36, 0.0 }
 0x171   : > { %875 = vrcp.f32 %v533_v39 }
 0x17d   : > { %v874_v38 = vpop.eup %873 }
 0x17e   : > { %v539_v40 = vmul.f32 %v874_v38, %v537_v36  ;;  %v876_v51 = vpop.eup %875 }
 0x17f   : > { %v535_v55 = vmul.f32 %v876_v51, %v531_v52 }
 0x180   : > { %v541_v42 = vsel %vm540_vm1, %v537_v36, %v539_v40 }
 0x181   : > { %v544_v43 = vsel %vm542_vm2, %v543_v41, %v541_v42 }
 0x182   : > { %v545_v44 = vadd.f32 0.03, %v544_v43 }
 0x184   : > { %877 = vrcp.f32 %v545_v44 }
 0x191   : > { %v878_v54 = vpop.eup %877 }
 0x192   : > { %v547_v56 = vmul.f32 %v878_v54, %v536_v53 }
 0x194   : > { %v548_v57 = vmul.f32 %v547_v56, %v535_v55 }
 0x196   : > { %v550_v58 = vsel %vm549_vm3, %v548_v57, 0.0 }
 0x197   : > { %551 = vadd.xlane.f32.xlu0 %v550_v58 }
 0x220   : > { %v552_v59 = vpop.xlane.xlu0 %551 }
 0x221   : > { %v554_v60 = vmul.f32 0.0078125, %v552_v59 }
 0x223   : > { %v555_v61 = vmax.f32 %v554_v60, 0.0 }
 0x225   : > { %v556_v62 = vmin.f32 %v555_v61, 1.0 }
 0x227   : > { %v557_v63 = vmul.f32 4.0, %v556_v62 }
 0x229   : > { %v558_v0 = vadd.f32 1.0, %v557_v63 }
 0x22b   : > { %559 = vst [vmem:[%s261_s20] sm:$0x1] %v558_v0 }
 0x22c   : > { %974 = shalt.err (!%p971_p11)
}
 0x22d   : > { %s975_s23 = scalar_lea.hbm %s571_s29, 16  ;;  %s979_s25 = scalar_lea.hbm %s1281_s3, 32 }
 0x22e   : > { %p976_p2 = scmp.ne.s32.totalorder %s571_s29, %s975_s23  ;;  %p980_p12 = scmp.lt.s32.totalorder %s571_s29, %s1281_s3 }
 0x22f   : > { %p981_p13 = scmp.lt.s32.totalorder %s979_s25, %s975_s23 }
 0x230   : > { %p977_p6 = pnand %p976_p2, %p1165_p0 }
 0x231   : > { %p982_p3 = por %p981_p13, %p980_p12 }
 0x232   : > { %p978_p9 = pneg %p977_p6 }
 0x234   : > { %p983_p1 = pnand %p982_p3, %p978_p9 }
 0x236   : > { %986 = shalt.err (!%p983_p1)
}
 0x237   : > { %781 = dma.vmem_to_hbm [thread:$0]  (%p1165_p0), %s574_s5, 16, %s571_s29, %s561_s9  }
 0x238 PF: > { %s585_s2 = sand.u32 1, %s1029_s12   ;;  %p1300_p4 = scmp.ne.s32.totalorder %s1289_s21, 0 }
 0x239   : > { %p1301_p8 = scmp.ge.s32.totalorder %s1049_s17, 2  ;;  %s586_s22 = scalar_lea.sflag [#allocation9], %s585_s2 }
 0x23b   : > { %p795_p10 = pnand %p1301_p8, %p1300_p4 }
 0x23d   : > { %p796_p5 = pneg %p795_p10 }
 0x23f   : > { %1024 = dma.done.wait (%p796_p5), %s586_s22, 16  }
 0x240   : > { %1026 = vsyncadd (%p796_p5), %s586_s22, 4294967280  ;;  %s22_s17 = sadd.s32 1, %s1049_s17   ;;  %s1302_s7 = sld [smem:[#allocation18_spill]] }
 0x241   : > { %p19_p7 = scmp.ge.s32.totalorder %s22_s17, 4   ;;  %s1303_s12 = smov %s1033_s13 }
 0x242   : > { %s1304_s13 = smov %s1037_s14  ;;  %s1305_s14 = smov %s1174_s11 }
 0x243   : > { %s1306_s15 = smov %s1045_s16  ;;  %21 = sbr.rel (!%p19_p7) target bundleno = 10 (0xa), region = 102 }
 0x246   : > { %s1307_s16 = smov %s1302_s7 }
 0x248   :  { %590 = vsyncpa [#allocation8], 1 }
 0x249   :  { %592 = vsyncpa [#allocation8 + $0x1], 1 }
 0x24a   :  { %593 = vsyncpa [#allocation11], 1 }
 0x24b   :  { %595 = vsyncpa [#allocation11 + $0x1], 1 }
 0x24c   :  { %596 = vsyncpa [#allocation9], 1 }
 0x24d   :  { %598 = vsyncpa [#allocation9 + $0x1], 1 }

</bundles_post_ra>
